<compile_context>
chip_gen: v7x
topology: tpu7x:2x2x1
jax: 0.10.0
libtpu: 0.0.40
codegen_flags: <defaults>
</compile_context>

<pallas_src>
import functools

import jax
import jax.numpy as jnp
from jax.experimental import pallas as pl
from jax.experimental.pallas import tpu as pltpu


def _round_up(x, m):
    return (x + m - 1) // m * m


def _patch_embed_kernel(x_ref, w_ref, b_ref, *rest, use_norm, eps, n_valid, n_pad):
    if use_norm:
        g_ref, beta_ref, o_ref = rest
    else:
        (o_ref,) = rest

    # (TM, K) @ (K, N_pad) on the MXU, f32 accumulation.
    y = jnp.dot(x_ref[...], w_ref[...], preferred_element_type=jnp.float32)
    y = y + b_ref[...]  # (1, N_pad) broadcast over rows

    if use_norm:
        # LayerNorm over the valid embed_dim columns only. Padded columns of y
        # are exactly zero (zero-padded weight and bias), so full-width sums
        # equal valid-width sums after correcting the centered second moment
        # for the (n_pad - n_valid) columns where (y - mean) == -mean.
        inv_n = 1.0 / float(n_valid)
        n_extra = float(n_pad - n_valid)
        mean = jnp.sum(y, axis=-1, keepdims=True) * inv_n
        d = y - mean
        var = (jnp.sum(d * d, axis=-1, keepdims=True) - n_extra * mean * mean) * inv_n
        inv = jax.lax.rsqrt(var + eps)
        y = d * inv * g_ref[...] + beta_ref[...]

    o_ref[...] = y.astype(o_ref.dtype)


def patch_embed_forward(x, weight, bias, gamma=None, beta=None, *,
                        patch_size=(4, 4), eps=1e-5,
                        compute_dtype=jnp.bfloat16, block_m=2048):
    """FocalNet PatchEmbed forward.

    x: (B, C, H, W) NCHW. weight: (embed_dim, C, ph, pw). bias: (embed_dim,).
    gamma/beta: optional (embed_dim,) LayerNorm params.
    Returns (B, embed_dim, Hp, Wp) float32.
    """
    ph, pw = patch_size
    B, C, H, W = x.shape
    embed_dim = weight.shape[0]
    use_norm = gamma is not None

    # Zero-pad W then H to multiples of the patch size (right/bottom), like F.pad.
    if W % pw != 0:
        x = jnp.pad(x, ((0, 0), (0, 0), (0, 0), (0, pw - W % pw)))
    if H % ph != 0:
        x = jnp.pad(x, ((0, 0), (0, 0), (0, ph - H % ph), (0, 0)))
    _, _, H, W = x.shape
    Hp, Wp = H // ph, W // pw

    # Patchify in the compute dtype (bf16 by default) so the (M, K) operand —
    # and any copy XLA does not manage to fuse — is half the bytes.
    xc = x.astype(compute_dtype)
    xp = xc.reshape(B, C, Hp, ph, Wp, pw)
    xp = jnp.transpose(xp, (0, 2, 4, 1, 3, 5)).reshape(B * Hp * Wp, C * ph * pw)

    M, K = xp.shape
    N = embed_dim
    N_pad = _round_up(N, 128)                 # lane-dense output stores
    TM = min(block_m, _round_up(M, 8))        # M tile (multiple of 8)
    M_pad = _round_up(M, TM)
    if M_pad != M:
        xp = jnp.pad(xp, ((0, M_pad - M), (0, 0)))

    # Conv weight (N, C, ph, pw) -> (K, N_pad); bias -> (1, N_pad). Zero-padded.
    w2d = weight.reshape(N, K).T.astype(compute_dtype)
    w2d = jnp.pad(w2d, ((0, 0), (0, N_pad - N)))
    b2d = jnp.pad(bias.astype(jnp.float32).reshape(1, N), ((0, 0), (0, N_pad - N)))

    inputs = [xp, w2d, b2d]
    in_specs = [
        pl.BlockSpec((TM, K), lambda i: (i, 0)),       # streamed over the grid
        pl.BlockSpec((K, N_pad), lambda i: (0, 0)),    # resident
        pl.BlockSpec((1, N_pad), lambda i: (0, 0)),    # resident
    ]
    if use_norm:
        g2d = jnp.pad(gamma.astype(jnp.float32).reshape(1, N),
                      ((0, 0), (0, N_pad - N)), constant_values=1.0)
        beta2d = jnp.pad(beta.astype(jnp.float32).reshape(1, N),
                         ((0, 0), (0, N_pad - N)))
        inputs += [g2d, beta2d]
        in_specs += [pl.BlockSpec((1, N_pad), lambda i: (0, 0)),
                     pl.BlockSpec((1, N_pad), lambda i: (0, 0))]

    kernel = functools.partial(_patch_embed_kernel, use_norm=use_norm, eps=eps,
                               n_valid=N, n_pad=N_pad)

    itemsize = jnp.dtype(compute_dtype).itemsize
    cost = pl.CostEstimate(
        flops=2 * M_pad * K * N_pad + (8 * M_pad * N_pad if use_norm else 0),
        transcendentals=M_pad if use_norm else 0,
        bytes_accessed=(M_pad * K * itemsize + K * N_pad * itemsize
                        + M_pad * N_pad * 4 + 3 * N_pad * 4),
    )

    out = pl.pallas_call(
        kernel,
        out_shape=jax.ShapeDtypeStruct((M_pad, N_pad), jnp.float32),
        grid_spec=pltpu.PrefetchScalarGridSpec(
            num_scalar_prefetch=0,
            grid=(M_pad // TM,),
            in_specs=in_specs,
            out_specs=pl.BlockSpec((TM, N_pad), lambda i: (i, 0)),
        ),
        compiler_params=pltpu.CompilerParams(
            dimension_semantics=("parallel",),
            # Allow XLA to fuse the patchify cast/transpose into the pallas
            # input rather than materializing the (M, K) copy in HBM.
            allow_input_fusion=[True] + [False] * (len(inputs) - 1),
        ),
        cost_estimate=cost,
    )(*inputs)

    # (M_pad, N_pad) -> (B, Hp, Wp, N) -> NCHW (B, N, Hp, Wp)
    out = out[:M, :N].reshape(B, Hp, Wp, N)
    return jnp.transpose(out, (0, 3, 1, 2))


def _reference_forward(x, weight, bias, gamma, beta, patch_size, eps=1e-5):
    """Pure-JAX reference (pad + conv + layernorm) for correctness checking."""
    ph, pw = patch_size
    _, _, H, W = x.shape
    if W % pw != 0:
        x = jnp.pad(x, ((0, 0), (0, 0), (0, 0), (0, pw - W % pw)))
    if H % ph != 0:
        x = jnp.pad(x, ((0, 0), (0, 0), (0, ph - H % ph), (0, 0)))
    y = jax.lax.conv_general_dilated(
        x, weight, window_strides=(ph, pw), padding="VALID",
        dimension_numbers=("NCHW", "OIHW", "NCHW"))
    y = y + bias.reshape(1, -1, 1, 1)
    if gamma is not None:
        mean = jnp.mean(y, axis=1, keepdims=True)
        var = jnp.mean((y - mean) ** 2, axis=1, keepdims=True)
        y = (y - mean) * jax.lax.rsqrt(var + eps)
        y = y * gamma.reshape(1, -1, 1, 1) + beta.reshape(1, -1, 1, 1)
    return y


if __name__ == "__main__":
    key = jax.random.PRNGKey(0)
    k1, k2, k3, k4, k5 = jax.random.split(key, 5)

    # Small shapes consistent with the module: patch_size=4, in_chans=4, embed_dim=32
    B, C, H, W = 2, 4, 16, 16
    patch_size = (4, 4)
    embed_dim = 32

    x = jax.random.normal(k1, (B, C, H, W), dtype=jnp.float32)
    weight = jax.random.normal(k2, (embed_dim, C, patch_size[0], patch_size[1]),
                               dtype=jnp.float32) * 0.05
    bias = jax.random.normal(k3, (embed_dim,), dtype=jnp.float32) * 0.02
    gamma = 1.0 + 0.1 * jax.random.normal(k4, (embed_dim,), dtype=jnp.float32)
    beta = 0.05 * jax.random.normal(k5, (embed_dim,), dtype=jnp.float32)

    Hp, Wp = H // patch_size[0], W // patch_size[1]
    ref = _reference_forward(x, weight, bias, gamma, beta, patch_size)

    # Default path: bf16 MXU operands, f32 accumulate / LayerNorm / output.
    out_bf16 = jax.block_until_ready(
        patch_embed_forward(x, weight, bias, gamma, beta, patch_size=patch_size))
    assert out_bf16.shape == (B, embed_dim, Hp, Wp)
    assert jnp.allclose(out_bf16, ref, atol=3e-2, rtol=3e-2)

    # f32 compute path matches the reference tightly.
    out_f32 = jax.block_until_ready(
        patch_embed_forward(x, weight, bias, gamma, beta, patch_size=patch_size,
                            compute_dtype=jnp.float32))
    assert jnp.allclose(out_f32, ref, atol=1e-4, rtol=1e-4)

    # norm_layer=None path (module default): gamma/beta operands are skipped.
    out_nonorm = jax.block_until_ready(
        patch_embed_forward(x, weight, bias, None, None, patch_size=patch_size,
                            compute_dtype=jnp.float32))
    ref_nonorm = _reference_forward(x, weight, bias, None, None, patch_size)
    assert jnp.allclose(out_nonorm, ref_nonorm, atol=1e-4, rtol=1e-4)

    # Non-divisible spatial size exercises the F.pad (right/bottom zero-pad) path.
    x_odd = jax.random.normal(k1, (B, C, 18, 18), dtype=jnp.float32)
    out_odd = jax.block_until_ready(
        patch_embed_forward(x_odd, weight, bias, gamma, beta, patch_size=patch_size,
                            compute_dtype=jnp.float32))
    ref_odd = _reference_forward(x_odd, weight, bias, gamma, beta, patch_size)
    assert out_odd.shape == (B, embed_dim, 5, 5)
    assert jnp.allclose(out_odd, ref_odd, atol=1e-4, rtol=1e-4)

    print("KERNEL_OK")
</pallas_src>

<mosaic_0001>
module attributes {stable_mosaic.version = 11 : i64} {
  func.func @_patch_embed_kernel(%arg0: i32, %arg1: memref<32x64xbf16, #tpu.memory_space<vmem>>, %arg2: memref<64x128xbf16, #tpu.memory_space<vmem>>, %arg3: memref<1x128xf32, #tpu.memory_space<vmem>>, %arg4: memref<1x128xf32, #tpu.memory_space<vmem>>, %arg5: memref<1x128xf32, #tpu.memory_space<vmem>>, %arg6: memref<32x128xf32, #tpu.memory_space<vmem>>) attributes {dimension_semantics = [#tpu.dimension_semantics<parallel>], iteration_bounds = array<i64: 1>, scalar_prefetch = 0 : i64, scratch_operands = 0 : i64, tpu.core_type = #tpu.core_type<tc>, window_params = [{transform_indices = @transform_0, window_bounds = array<i64: 32, 64>}, {pipeline_mode = #tpu.pipeline_mode<synchronous>, transform_indices = @transform_1, window_bounds = array<i64: 64, 128>}, {pipeline_mode = #tpu.pipeline_mode<synchronous>, transform_indices = @transform_2, window_bounds = array<i64: 1, 128>}, {pipeline_mode = #tpu.pipeline_mode<synchronous>, transform_indices = @transform_3, window_bounds = array<i64: 1, 128>}, {pipeline_mode = #tpu.pipeline_mode<synchronous>, transform_indices = @transform_4, window_bounds = array<i64: 1, 128>}, {transform_indices = @transform_5, window_bounds = array<i64: 32, 128>}]} {
    %c0 = arith.constant 0 : index
    %c0_0 = arith.constant 0 : index
    %0 = vector.load %arg1[%c0, %c0_0] : memref<32x64xbf16, #tpu.memory_space<vmem>>, vector<32x64xbf16>
    %c0_1 = arith.constant 0 : index
    %c0_2 = arith.constant 0 : index
    %1 = vector.load %arg2[%c0_1, %c0_2] : memref<64x128xbf16, #tpu.memory_space<vmem>>, vector<64x128xbf16>
    %cst = arith.constant dense<0.000000e+00> : vector<32x128xf32>
    %2 = tpu.matmul %0, %1, %cst {dimension_numbers = #tpu.dot_dimension_numbers<[1], [0], [0], [1], [0, 0, 1, 1], [], []>} : vector<32x64xbf16>, vector<64x128xbf16>, vector<32x128xf32> -> vector<32x128xf32>
    %c0_3 = arith.constant 0 : index
    %c0_4 = arith.constant 0 : index
    %3 = vector.load %arg3[%c0_3, %c0_4] : memref<1x128xf32, #tpu.memory_space<vmem>>, vector<1x128xf32>
    %4 = vector.broadcast %3 : vector<1x128xf32> to vector<32x128xf32>
    %5 = arith.addf %2, %4 : vector<32x128xf32>
    %cst_5 = arith.constant dense<0.000000e+00> : vector<32xf32>
    %6 = vector.multi_reduction <add>, %5, %cst_5 [1] : vector<32x128xf32> to vector<32xf32>
    %7 = vector.shape_cast %6 : vector<32xf32> to vector<32x1xf32>
    %cst_6 = arith.constant 3.125000e-02 : f32
    %8 = vector.broadcast %cst_6 : f32 to vector<32x1xf32>
    %9 = arith.mulf %7, %8 : vector<32x1xf32>
    %10 = vector.broadcast %9 : vector<32x1xf32> to vector<32x128xf32>
    %11 = arith.subf %5, %10 : vector<32x128xf32>
    %12 = arith.mulf %11, %11 : vector<32x128xf32>
    %cst_7 = arith.constant dense<0.000000e+00> : vector<32xf32>
    %13 = vector.multi_reduction <add>, %12, %cst_7 [1] : vector<32x128xf32> to vector<32xf32>
    %14 = vector.shape_cast %13 : vector<32xf32> to vector<32x1xf32>
    %cst_8 = arith.constant 9.600000e+01 : f32
    %15 = vector.broadcast %cst_8 : f32 to vector<32x1xf32>
    %16 = arith.mulf %15, %9 : vector<32x1xf32>
    %17 = arith.mulf %16, %9 : vector<32x1xf32>
    %18 = arith.subf %14, %17 : vector<32x1xf32>
    %cst_9 = arith.constant 3.125000e-02 : f32
    %19 = vector.broadcast %cst_9 : f32 to vector<32x1xf32>
    %20 = arith.mulf %18, %19 : vector<32x1xf32>
    %cst_10 = arith.constant 9.99999974E-6 : f32
    %21 = vector.broadcast %cst_10 : f32 to vector<32x1xf32>
    %22 = arith.addf %20, %21 : vector<32x1xf32>
    %23 = math.rsqrt %22 : vector<32x1xf32>
    %24 = vector.broadcast %23 : vector<32x1xf32> to vector<32x128xf32>
    %25 = arith.mulf %11, %24 : vector<32x128xf32>
    %c0_11 = arith.constant 0 : index
    %c0_12 = arith.constant 0 : index
    %26 = vector.load %arg4[%c0_11, %c0_12] : memref<1x128xf32, #tpu.memory_space<vmem>>, vector<1x128xf32>
    %27 = vector.broadcast %26 : vector<1x128xf32> to vector<32x128xf32>
    %28 = arith.mulf %25, %27 : vector<32x128xf32>
    %c0_13 = arith.constant 0 : index
    %c0_14 = arith.constant 0 : index
    %29 = vector.load %arg5[%c0_13, %c0_14] : memref<1x128xf32, #tpu.memory_space<vmem>>, vector<1x128xf32>
    %30 = vector.broadcast %29 : vector<1x128xf32> to vector<32x128xf32>
    %31 = arith.addf %28, %30 : vector<32x128xf32>
    %c0_15 = arith.constant 0 : index
    %c0_16 = arith.constant 0 : index
    %32 = vector.load %arg6[%c0_15, %c0_16] : memref<32x128xf32, #tpu.memory_space<vmem>>, vector<32x128xf32>
    tpu.vector_store %arg6[%c0_15, %c0_16], %31 {strides = array<i32>} : memref<32x128xf32, #tpu.memory_space<vmem>>, vector<32x128xf32>,
    return
  }
  func.func @transform_0(%arg0: i32) -> (i32, i32) {
    %c0_i32 = arith.constant 0 : i32
    %c0_i32_0 = arith.constant 0 : i32
    return %arg0, %c0_i32 : i32, i32
  }
  func.func @transform_1(%arg0: i32) -> (i32, i32) {
    %c0_i32 = arith.constant 0 : i32
    %c0_i32_0 = arith.constant 0 : i32
    %c0_i32_1 = arith.constant 0 : i32
    return %c0_i32, %c0_i32_0 : i32, i32
  }
  func.func @transform_2(%arg0: i32) -> (i32, i32) {
    %c0_i32 = arith.constant 0 : i32
    %c0_i32_0 = arith.constant 0 : i32
    %c0_i32_1 = arith.constant 0 : i32
    return %c0_i32, %c0_i32_0 : i32, i32
  }
  func.func @transform_3(%arg0: i32) -> (i32, i32) {
    %c0_i32 = arith.constant 0 : i32
    %c0_i32_0 = arith.constant 0 : i32
    %c0_i32_1 = arith.constant 0 : i32
    return %c0_i32, %c0_i32_0 : i32, i32
  }
  func.func @transform_4(%arg0: i32) -> (i32, i32) {
    %c0_i32 = arith.constant 0 : i32
    %c0_i32_0 = arith.constant 0 : i32
    %c0_i32_1 = arith.constant 0 : i32
    return %c0_i32, %c0_i32_0 : i32, i32
  }
  func.func @transform_5(%arg0: i32) -> (i32, i32) {
    %c0_i32 = arith.constant 0 : i32
    %c0_i32_0 = arith.constant 0 : i32
    return %arg0, %c0_i32 : i32, i32
  }
}

</mosaic_0001>

<bundles_post_ra>
// kernel: tpu_custom_call.1
= control target key start
LH: loop header
LB: loop body
LE: loop exit
PB: predicated region body
PF: predicated region fallthrough
CT: control target
= control target key end

     0   :  { %10 = vsyncpa [#allocation3], 0  ;;  %s463_s0 = inlined_call_operand.hbm [shape: bf16[32,64], index: 0, kind: input, shape index: {}]   ;;  %s464_s1 = inlined_call_operand.hbm [shape: bf16[64,128], index: 1, kind: input, shape index: {}]   ;;  %s465_s2 = inlined_call_operand.vmem [shape: f32[1,128], index: 2, kind: input, shape index: {}]   ;;  %s466_s3 = inlined_call_operand.vmem [shape: f32[1,128], index: 3, kind: input, shape index: {}]   ;;  %s467_s4 = inlined_call_operand.vmem [shape: f32[1,128], index: 4, kind: input, shape index: {}]   ;;  %s468_s5 = inlined_call_operand.hbm [shape: f32[32,128], index: 5, kind: output, shape index: {}]  }
   0x1   :  { %11 = vsyncpa [#allocation6], 0 }
   0x2   :  { %12 = vsyncpa [#allocation4], 0  ;;  %s381_s18 = smov [#allocation2]   ;;  %s309_s22 = scalar_lea.hbm %s463_s0, 256 }
   0x3   :  { %s18_s19 = sshll.u32 %s381_s18, 4  ;;  %p310_p0 = scmp.ne.s32.totalorder %s463_s0, %s309_s22  ;;  %s19_s19 = int_to_ptr.vmem [resolvable:$true] %s18_s19 }
   0x4   :  { %p313_p1 = scmp.lt.u32.totalorder %s309_s22, %s463_s0 }
   0x6   :  { %p315_p2 = pnand %p313_p1, %p310_p0 }
   0x8   :  { %318 = shalt.err (!%p315_p2)
}
   0x9   :  { %s319_s27 = scalar_lea.vmem %s19_s19, 256  ;;  %p324_p4 = scmp.lt.s32.totalorder %s19_s19, %s19_s19 }
   0xa   :  { %p320_p3 = scmp.ne.s32.totalorder %s19_s19, %s319_s27  ;;  %p325_p5 = scmp.lt.s32.totalorder %s319_s27, %s319_s27 }
   0xc   :  { %p326_p6 = por %p325_p5, %p324_p4 }
   0xe   :  { %p327_p7 = pnand %p326_p6, %p320_p3 }
  0x10   :  { %330 = shalt.err (!%p327_p7)
}
  0x11   :  { %s382_s28 = smov 64   ;;  %s383_s29 = smov 4  }
  0x12   :  { %24 = dma.hbm_to_vmem [thread:$0]  %s463_s0, 256, %s19_s19, [#allocation3], %s382_s28, %s382_s28, %s383_s29  }
  0x13   :  { %s384_s7 = smov [#allocation5]   ;;  %s331_s11 = scalar_lea.hbm %s464_s1, 512 }
  0x14   :  { %s30_s8 = sshll.u32 %s384_s7, 4  ;;  %p332_p8 = scmp.ne.s32.totalorder %s464_s1, %s331_s11  ;;  %s31_s8 = int_to_ptr.vmem [resolvable:$true] %s30_s8 }
  0x15   :  { %p335_p9 = scmp.lt.u32.totalorder %s331_s11, %s464_s1 }
  0x17   :  { %p337_p10 = pnand %p335_p9, %p332_p8 }
  0x19   :  { %340 = shalt.err (!%p337_p10)
}
  0x1a   :  { %s341_s16 = scalar_lea.vmem %s31_s8, 512  ;;  %p346_p12 = scmp.lt.s32.totalorder %s31_s8, %s31_s8 }
  0x1b   :  { %p342_p11 = scmp.ne.s32.totalorder %s31_s8, %s341_s16  ;;  %p347_p13 = scmp.lt.s32.totalorder %s341_s16, %s341_s16 }
  0x1d   :  { %p348_p0 = por %p347_p13, %p346_p12 }
  0x1f   :  { %p349_p1 = pnand %p348_p0, %p342_p11 }
  0x21   :  { %352 = shalt.err (!%p349_p1)
}
  0x22   :  { %36 = dma.hbm_to_vmem [thread:$0]  %s464_s1, 512, %s31_s8, [#allocation6], %s382_s28, %s382_s28, %s383_s29  }
  0x23   :  { %375 = dma.done.wait [#allocation3], 256  }
  0x24   :  { %376 = vsyncadd [#allocation3], 4294967040 }
  0x25   :  { %377 = dma.done.wait [#allocation6], 512  }
  0x26   :  { %378 = vsyncadd [#allocation6], 4294966784  ;;  %v295_v0 = vld [vmem:[#allocation5] sm:$0xff]   ;;  %v296_v1 = vld [vmem:[#allocation5 + $0x8] sm:$0xff]   ;;  %vm103_vm0 = vcmask 523264   ;;  %s385_s22 = smov [#allocation7]  }
  0x27   :  { %276 = vmatprep.subr.bf16.mxu0 %v295_v0  ;;  %v297_v2 = vld [vmem:[#allocation5 + $0x10] sm:$0xff]   ;;  %v298_v4 = vld [vmem:[#allocation5 + $0x18] sm:$0xff]  }
  0x28   :  { %277 = vmatpush3.bf16.msra.mxu0 %v295_v0  ;;  %v299_v3 = vld [vmem:[#allocation2] sm:$0xff]   ;;  %v300_v5 = vld [vmem:[#allocation2 + $0x8] sm:$0xff]  }
  0x29   :  { %278 = vmatprep.subr.bf16.mxu0 %v296_v1  ;;  %284 = vmatprep.mubr.msk.bf16.mxu0 %vm103_vm0, %v299_v3  ;;  %v259_v6 = vld [vmem:[%s465_s2] ss:$0 sm:$0xff] }
  0x2a   :  { %v268_v56 = vld [vmem:[%s466_s3] ss:$0 sm:$0xff]  ;;  %s246_s3 = sshll.u32 %s385_s22, 4  ;;  %s247_s3 = int_to_ptr.vmem [resolvable:$true] %s246_s3 }
  0x2b   :  { %v269_v58 = vld [vmem:[%s467_s4] ss:$0 sm:$0xff]  ;;  %s353_s4 = scalar_lea.vmem %s247_s3, 512  ;;  %p358_p3 = scmp.lt.s32.totalorder %s247_s3, %s247_s3 }
  0x2c   :  { %279 = vmatpush3.bf16.msra.mxu0 %v296_v1  ;;  %p354_p2 = scmp.ne.s32.totalorder %s247_s3, %s353_s4  ;;  %p359_p4 = scmp.lt.s32.totalorder %s353_s4, %s353_s4 }
  0x2d   :  { %280 = vmatprep.subr.bf16.mxu0 %v297_v2 }
  0x2e   :  { %p360_p5 = por %p359_p4, %p358_p3 }
  0x30   :  { %281 = vmatpush3.bf16.msra.mxu0 %v297_v2  ;;  %p361_p6 = pnand %p360_p5, %p354_p2 }
  0x31   :  { %282 = vmatprep.subr.bf16.mxu0 %v298_v4 }
  0x34   :  { %283 = vmatpush3.bf16.msra.mxu0 %v298_v4 }
  0x37   :  { %285 = vmatmul.mubr.msk.bf16.vlgmr.msra.gmra.mrb[0].mxu0 %vm103_vm0, %v300_v5 }
 0x10a   :  { %v286_v7 = vpop.f32.mrb[0].mxu0 }
 0x10b   :  { %v153_v8 = vadd.f32 %v286_v7, %v259_v6  ;;  %v144_v9 = vpop.f32.mrb[1].mxu0 }
 0x10c   :  { %v145_v10 = vadd.f32 %v259_v6, %v144_v9  ;;  %v287_v11 = vpop.f32.mrb[2].mxu0 }
 0x10d   :  { %163 = vadd.xlane.f32.xlu1 %v153_v8  ;;  %v147_v12 = vpop.f32.mrb[3].mxu0  ;;  %v156_v13 = vadd.f32 %v287_v11, %v259_v6 }
 0x10e   :  { %159 = vadd.xlane.f32.xlu0 %v145_v10  ;;  %v148_v14 = vadd.f32 %v259_v6, %v147_v12 }
 0x111   :  { %165 = vadd.xlane.f32.xlu1 %v156_v13 }
 0x112   :  { %161 = vadd.xlane.f32.xlu0 %v148_v14 }
 0x19a   :  { %v164_v15 = vpop.xlane.xlu1 %163 }
 0x19b   :  { %v160_v16 = vpop.xlane.xlu0 %159  ;;  %v169_v17 = vmul.f32 0.03125, %v164_v15 }
 0x19c   :  { %v167_v18 = vmul.f32 0.03125, %v160_v16 }
 0x19d   :  { %v173_v25 = vsub.f32 %v153_v8, %v169_v17  ;;  %v189_v34 = vmul.f32 96.0, %v169_v17 }
 0x19e   :  { %v166_v19 = vpop.xlane.xlu1 %165  ;;  %v171_v20 = vsub.f32 %v145_v10, %v167_v18  ;;  %v187_v31 = vmul.f32 96.0, %v167_v18 }
 0x19f   :  { %v162_v21 = vpop.xlane.xlu0 %161  ;;  %v170_v22 = vmul.f32 0.03125, %v166_v19  ;;  %v177_v27 = vmul.f32 %v173_v25, %v173_v25  ;;  %v193_v39 = vmul.f32 %v189_v34, %v169_v17 }
 0x1a0   :  { %v168_v23 = vmul.f32 0.03125, %v162_v21  ;;  %v175_v24 = vmul.f32 %v171_v20, %v171_v20  ;;  %v191_v32 = vmul.f32 %v187_v31, %v167_v18 }
 0x1a1   :  { %v174_v29 = vsub.f32 %v156_v13, %v170_v22  ;;  %v190_v40 = vmul.f32 96.0, %v170_v22 }
 0x1a2   :  { %179 = vadd.xlane.f32.xlu0 %v175_v24  ;;  %v172_v26 = vsub.f32 %v148_v14, %v168_v23  ;;  %v188_v33 = vmul.f32 96.0, %v168_v23 }
 0x1a3   :  { %v178_v30 = vmul.f32 %v174_v29, %v174_v29  ;;  %v194_v48 = vmul.f32 %v190_v40, %v170_v22 }
 0x1a4   :  { %v176_v28 = vmul.f32 %v172_v26, %v172_v26  ;;  %v192_v38 = vmul.f32 %v188_v33, %v168_v23 }
 0x1a6   :  { %183 = vadd.xlane.f32.xlu0 %v177_v27  ;;  %181 = vadd.xlane.f32.xlu1 %v176_v28 }
 0x1aa   :  { %185 = vadd.xlane.f32.xlu1 %v178_v30 }
 0x22f   :  { %v180_v35 = vpop.xlane.xlu0 %179 }
 0x230   :  { %v195_v36 = vsub.f32 %v180_v35, %v191_v32 }
 0x232   :  { %v199_v37 = vmul.f32 0.03125, %v195_v36 }
 0x233   :  { %v182_v41 = vpop.xlane.xlu1 %181  ;;  %v184_v42 = vpop.xlane.xlu0 %183 }
 0x234   :  { %v203_v43 = vadd.f32 1e-05, %v199_v37  ;;  %v196_v44 = vsub.f32 %v182_v41, %v192_v38  ;;  %v197_v45 = vsub.f32 %v184_v42, %v193_v39 }
 0x236   :  { %301 = vrsqrt.f32 %v203_v43  ;;  %v200_v46 = vmul.f32 0.03125, %v196_v44  ;;  %v201_v47 = vmul.f32 0.03125, %v197_v45 }
 0x237   :  { %v186_v49 = vpop.xlane.xlu1 %185 }
 0x238   :  { %v204_v50 = vadd.f32 1e-05, %v200_v46  ;;  %v205_v51 = vadd.f32 1e-05, %v201_v47  ;;  %v198_v52 = vsub.f32 %v186_v49, %v194_v48 }
 0x23a   :  { %303 = vrsqrt.f32 %v204_v50  ;;  %v202_v53 = vmul.f32 0.03125, %v198_v52 }
 0x23b   :  { %305 = vrsqrt.f32 %v205_v51 }
 0x23c   :  { %v206_v54 = vadd.f32 1e-05, %v202_v53 }
 0x23e   :  { %307 = vrsqrt.f32 %v206_v54 }
 0x240   :  { %v302_v55 = vpop.eup %301 }
 0x241   :  { %v211_v57 = vmul.f32 %v302_v55, %v171_v20 }
 0x243   :  { %v222_v59 = vmul.f32 %v268_v56, %v211_v57 }
 0x244   :  { %v304_v60 = vpop.eup %303 }
 0x245   :  { %v306_v61 = vpop.eup %305  ;;  %v233_v62 = vadd.f32 %v269_v58, %v222_v59  ;;  %v212_v63 = vmul.f32 %v304_v60, %v172_v26 }
 0x246   :  { %v213_v0 = vmul.f32 %v306_v61, %v173_v25 }
 0x247   :  { %237 = vst [vmem:[#allocation7] sm:$0xff] %v233_v62  ;;  %v223_v1 = vmul.f32 %v268_v56, %v212_v63 }
 0x248   :  { %v308_v2 = vpop.eup %307  ;;  %v224_v3 = vmul.f32 %v268_v56, %v213_v0 }
 0x249   :  { %v234_v4 = vadd.f32 %v269_v58, %v223_v1  ;;  %v214_v5 = vmul.f32 %v308_v2, %v174_v29 }
 0x24a   :  { %v235_v6 = vadd.f32 %v269_v58, %v224_v3 }
 0x24b   :  { %238 = vst [vmem:[#allocation7 + $0x8] sm:$0xff] %v234_v4  ;;  %v225_v7 = vmul.f32 %v268_v56, %v214_v5 }
 0x24c   :  { %239 = vst [vmem:[#allocation7 + $0x10] sm:$0xff] %v235_v6 }
 0x24d   :  { %v236_v8 = vadd.f32 %v269_v58, %v225_v7 }
 0x24f   :  { %240 = vst [vmem:[#allocation7 + $0x18] sm:$0xff] %v236_v8 }
 0x250   :  { %364 = shalt.err (!%p361_p6)
}
 0x251   :  { %s365_s25 = scalar_lea.hbm %s468_s5, 512 }
 0x252   :  { %p366_p7 = scmp.ne.s32.totalorder %s468_s5, %s365_s25  ;;  %p369_p8 = scmp.lt.u32.totalorder %s365_s25, %s468_s5 }
 0x254   :  { %p371_p9 = pnand %p369_p8, %p366_p7 }
 0x256   :  { %374 = shalt.err (!%p371_p9)
}
 0x257   :  { %s386_s30 = smov 128   ;;  %s387_s6 = smov 8  }
 0x258   :  { %252 = dma.vmem_to_hbm [thread:$0]  %s247_s3, 512, %s468_s5, [#allocation4], %s386_s30, %s386_s30, %s387_s6  }
 0x259   :  { %379 = dma.done.wait [#allocation4], 512  }
 0x25a   :  { %380 = vsyncadd [#allocation4], 4294966784 }
 0x25b   :  { %256 = vsyncpa [#allocation3], 1 }
 0x25c   :  { %257 = vsyncpa [#allocation6], 1 }
 0x25d   :  { %258 = vsyncpa [#allocation4], 1 }

</bundles_post_ra>
